<compile_context>
chip_gen: v7x
topology: tpu7x:2x2x1
jax: 0.10.0
libtpu: 0.0.40
codegen_flags: <defaults>
</compile_context>

<pallas_src>
import jax
import jax.numpy as jnp
from jax.experimental import pallas as pl
from jax.experimental.pallas import tpu as pltpu

HIDDEN = 64
OUT_PAD = 128  # lane-dense fused-weight / output minor dimension


def actor_critic_kernel(x_ref, w_ref, b_ref, mask_ref, onehot_ref, out_ref):
    """One batch tile.

    x_ref      : (TILE_B, D)   streamed state (bf16)
    w_ref      : (D, 128)      fused affine weight (bf16, VMEM-resident):
                               cols [:O] = actor, col O = critic, rest 0
    b_ref      : (1, 128) f32  fused bias, same column layout
    mask_ref   : (1, 128) f32  0 on policy lanes, -1e30 elsewhere
    onehot_ref : (1, 128) f32  1 on the critic-value lane, 0 elsewhere
    out_ref    : (TILE_B, 128) f32: [:O] = softmax policy, col O = value, rest 0
    """
    # Single fused MXU matmul (bf16 operands, f32 accumulation) + f32 bias.
    y = jnp.dot(x_ref[...], w_ref[...],
                preferred_element_type=jnp.float32) + b_ref[...]

    # Numerically-stable softmax over the policy lanes only. The additive mask
    # drives value/padding lanes to exp(-huge) == 0 without ever producing inf.
    logits = y + mask_ref[...]
    m = jnp.max(logits, axis=-1, keepdims=True)
    e = jnp.exp(logits - m)
    denom = jnp.sum(e, axis=-1, keepdims=True)
    inv = pl.reciprocal(denom, approx=True)      # EUP slot, ~free
    inv = inv * (2.0 - denom * inv)              # one Newton step -> ~f32 accuracy
    policy = e * inv

    # Lane-dense store: policy in [:O], critic value (taken from y) at col O,
    # zeros elsewhere (policy is 0 on those lanes, y is 0 on padding lanes).
    out_ref[...] = (policy + onehot_ref[...] * y).astype(out_ref.dtype)


def _round_up(x, m):
    return (x + m - 1) // m * m


def _fuse_params(params, stream_dtype):
    """Host-side algebraic fold of both 2-layer heads into one (D,128) affine."""
    O = params["w2a"].shape[1]
    assert O + 1 <= OUT_PAD, "output_dim + 1 must fit in the 128-lane slab"

    wa = params["w1a"] @ params["w2a"]                     # (D, O)
    ba = params["b1a"] @ params["w2a"] + params["b2a"]     # (1, O)
    wc = params["w1c"] @ params["w2c"]                     # (D, 1)
    bc = params["b1c"] @ params["w2c"] + params["b2c"]     # (1, 1)
    D = wa.shape[0]

    w = jnp.zeros((D, OUT_PAD), jnp.float32)
    w = w.at[:, :O].set(wa).at[:, O:O + 1].set(wc)
    b = jnp.zeros((1, OUT_PAD), jnp.float32)
    b = b.at[:, :O].set(ba).at[:, O:O + 1].set(bc)

    lane = jnp.arange(OUT_PAD)
    mask = jnp.where(lane < O, 0.0, -1e30).astype(jnp.float32)[None, :]
    onehot = (lane == O).astype(jnp.float32)[None, :]
    return w.astype(stream_dtype), b, mask, onehot, O


def _choose_tile(batch, tile_b, align):
    """Batch tile: multiple of `align`; aim for >= 2 grid steps when possible so
    the 'parallel' axis can shard across both v7x TensorCores."""
    b_aligned = _round_up(batch, align)
    if b_aligned <= tile_b:
        tb = max(_round_up(pl.cdiv(b_aligned, 2), align), align)
        if tb >= b_aligned:           # batch too small to split further
            tb = b_aligned
    else:
        tb = _round_up(tile_b, align)
    b_pad = _round_up(batch, tb)
    return tb, b_pad


def actor_critic_forward(state, params, *, tile_b=512, stream_dtype=jnp.bfloat16):
    """state: (B, input_dim) float32. Returns (policy (B, O), value (B, 1))."""
    B, D = state.shape
    w, b, mask, onehot, O = _fuse_params(params, stream_dtype)

    in_item = jnp.dtype(stream_dtype).itemsize
    align = 16 if in_item < 4 else 8          # sublane packing of streamed dtype
    tb, b_pad = _choose_tile(B, tile_b, align)
    if b_pad != B:
        state = jnp.pad(state, ((0, b_pad - B), (0, 0)))
    state = state.astype(stream_dtype)

    # VMEM budget: double-buffered state/output tiles + (double-buffered) fused
    # weight + tiny bias/mask rows, with 2x headroom; clamp to v7x-safe 64 MiB.
    need = (2 * tb * D * in_item + 2 * tb * OUT_PAD * 4
            + 2 * D * OUT_PAD * in_item + 6 * OUT_PAD * 4)
    vmem_limit = int(min(max(2 * need, 16 * 2 ** 20), 64 * 2 ** 20))

    cost = pl.CostEstimate(
        flops=2 * b_pad * D * OUT_PAD,
        transcendentals=b_pad * OUT_PAD,
        bytes_accessed=(b_pad * D * in_item + D * OUT_PAD * in_item
                        + 3 * OUT_PAD * 4 + b_pad * OUT_PAD * 4),
    )

    out = pl.pallas_call(
        actor_critic_kernel,
        out_shape=jax.ShapeDtypeStruct((b_pad, OUT_PAD), jnp.float32),
        grid=(b_pad // tb,),
        in_specs=[
            pl.BlockSpec((tb, D), lambda i: (i, 0)),            # state (pipelined)
            pl.BlockSpec((D, OUT_PAD), lambda i: (0, 0)),       # fused W (resident)
            pl.BlockSpec((1, OUT_PAD), lambda i: (0, 0)),       # fused bias
            pl.BlockSpec((1, OUT_PAD), lambda i: (0, 0)),       # softmax mask
            pl.BlockSpec((1, OUT_PAD), lambda i: (0, 0)),       # value one-hot
        ],
        out_specs=pl.BlockSpec((tb, OUT_PAD), lambda i: (i, 0)),
        compiler_params=pltpu.CompilerParams(
            dimension_semantics=("parallel",),
            vmem_limit_bytes=vmem_limit,
        ),
        cost_estimate=cost,
    )(state, w, b, mask, onehot)

    policy = out[:B, :O]
    value = out[:B, O:O + 1]
    return policy, value


def init_params(key, input_dim, output_dim, hidden=HIDDEN):
    """Deterministic init mimicking PyTorch Linear default (U(+-1/sqrt(fan_in))).
    Weights stored as (in_features, out_features)."""
    ks = jax.random.split(key, 8)

    def lin(kw, kb, fan_in, fan_out):
        bound = 1.0 / jnp.sqrt(jnp.float32(fan_in))
        w = jax.random.uniform(kw, (fan_in, fan_out), jnp.float32, -bound, bound)
        b = jax.random.uniform(kb, (1, fan_out), jnp.float32, -bound, bound)
        return w, b

    w1a, b1a = lin(ks[0], ks[1], input_dim, hidden)
    w2a, b2a = lin(ks[2], ks[3], hidden, output_dim)
    w1c, b1c = lin(ks[4], ks[5], input_dim, hidden)
    w2c, b2c = lin(ks[6], ks[7], hidden, 1)
    return dict(w1a=w1a, b1a=b1a, w2a=w2a, b2a=b2a,
                w1c=w1c, b1c=b1c, w2c=w2c, b2c=b2c)


def reference_forward(state, p):
    """Pure-JAX f32 reference (unfused, matches the PyTorch module)."""
    logits = (state @ p["w1a"] + p["b1a"]) @ p["w2a"] + p["b2a"]
    policy = jax.nn.softmax(logits, axis=-1)
    value = (state @ p["w1c"] + p["b1c"]) @ p["w2c"] + p["b2c"]
    return policy, value


if __name__ == "__main__":
    key = jax.random.PRNGKey(0)
    k_param, k_state = jax.random.split(key)

    # Small shapes; B intentionally not tile-aligned to exercise batch padding
    # and a 2-step grid.
    B, INPUT_DIM, OUTPUT_DIM = 20, 16, 8
    params = init_params(k_param, INPUT_DIM, OUTPUT_DIM)
    state = jax.random.normal(k_state, (B, INPUT_DIM), jnp.float32)

    policy, value = actor_critic_forward(state, params)
    jax.block_until_ready((policy, value))

    policy_ref, value_ref = reference_forward(state, params)
    assert policy.shape == (B, OUTPUT_DIM) and value.shape == (B, 1)
    # bf16-streamed operands (f32 accumulation) -> ~1e-3-level operand rounding.
    assert jnp.allclose(policy, policy_ref, atol=2e-2, rtol=2e-2)
    assert jnp.allclose(value, value_ref, atol=2e-2, rtol=2e-2)
    # Newton-refined reciprocal -> rows sum to 1 at ~f32 accuracy.
    assert jnp.allclose(jnp.sum(policy, axis=-1), 1.0, atol=1e-4)

    print("KERNEL_OK")
</pallas_src>

<mosaic_0001>
module attributes {stable_mosaic.version = 11 : i64} {
  func.func @actor_critic_kernel(%arg0: i32, %arg1: memref<16x16xbf16, #tpu.memory_space<vmem>>, %arg2: memref<16x128xbf16, #tpu.memory_space<vmem>>, %arg3: memref<1x128xf32, #tpu.memory_space<vmem>>, %arg4: memref<1x128xf32, #tpu.memory_space<vmem>>, %arg5: memref<1x128xf32, #tpu.memory_space<vmem>>, %arg6: memref<16x128xf32, #tpu.memory_space<vmem>>) attributes {dimension_semantics = [#tpu.dimension_semantics<parallel>], iteration_bounds = array<i64: 2>, scalar_prefetch = 0 : i64, scratch_operands = 0 : i64, tpu.core_type = #tpu.core_type<tc>, window_params = [{transform_indices = @transform_0, window_bounds = array<i64: 16, 16>}, {pipeline_mode = #tpu.pipeline_mode<synchronous>, transform_indices = @transform_1, window_bounds = array<i64: 16, 128>}, {pipeline_mode = #tpu.pipeline_mode<synchronous>, transform_indices = @transform_2, window_bounds = array<i64: 1, 128>}, {pipeline_mode = #tpu.pipeline_mode<synchronous>, transform_indices = @transform_3, window_bounds = array<i64: 1, 128>}, {pipeline_mode = #tpu.pipeline_mode<synchronous>, transform_indices = @transform_4, window_bounds = array<i64: 1, 128>}, {transform_indices = @transform_5, window_bounds = array<i64: 16, 128>}]} {
    %c0 = arith.constant 0 : index
    %c0_0 = arith.constant 0 : index
    %0 = vector.load %arg1[%c0, %c0_0] : memref<16x16xbf16, #tpu.memory_space<vmem>>, vector<16x16xbf16>
    %c0_1 = arith.constant 0 : index
    %c0_2 = arith.constant 0 : index
    %1 = vector.load %arg2[%c0_1, %c0_2] : memref<16x128xbf16, #tpu.memory_space<vmem>>, vector<16x128xbf16>
    %cst = arith.constant dense<0.000000e+00> : vector<16x128xf32>
    %2 = tpu.matmul %0, %1, %cst {dimension_numbers = #tpu.dot_dimension_numbers<[1], [0], [0], [1], [0, 0, 1, 1], [], []>} : vector<16x16xbf16>, vector<16x128xbf16>, vector<16x128xf32> -> vector<16x128xf32>
    %c0_3 = arith.constant 0 : index
    %c0_4 = arith.constant 0 : index
    %3 = vector.load %arg3[%c0_3, %c0_4] : memref<1x128xf32, #tpu.memory_space<vmem>>, vector<1x128xf32>
    %4 = vector.broadcast %3 : vector<1x128xf32> to vector<16x128xf32>
    %5 = arith.addf %2, %4 : vector<16x128xf32>
    %c0_5 = arith.constant 0 : index
    %c0_6 = arith.constant 0 : index
    %6 = vector.load %arg4[%c0_5, %c0_6] : memref<1x128xf32, #tpu.memory_space<vmem>>, vector<1x128xf32>
    %7 = vector.broadcast %6 : vector<1x128xf32> to vector<16x128xf32>
    %8 = arith.addf %5, %7 : vector<16x128xf32>
    %cst_7 = arith.constant dense<0xFF800000> : vector<16xf32>
    %9 = vector.multi_reduction <maximumf>, %8, %cst_7 [1] : vector<16x128xf32> to vector<16xf32>
    %10 = vector.shape_cast %9 : vector<16xf32> to vector<16x1xf32>
    %11 = vector.broadcast %10 : vector<16x1xf32> to vector<16x128xf32>
    %12 = arith.subf %8, %11 : vector<16x128xf32>
    %13 = math.exp %12 : vector<16x128xf32>
    %cst_8 = arith.constant dense<0.000000e+00> : vector<16xf32>
    %14 = vector.multi_reduction <add>, %13, %cst_8 [1] : vector<16x128xf32> to vector<16xf32>
    %15 = vector.shape_cast %14 : vector<16xf32> to vector<16x1xf32>
    %16 = tpu.reciprocal %15 {approx = true} : vector<16x1xf32> -> vector<16x1xf32>
    %17 = arith.mulf %15, %16 : vector<16x1xf32>
    %cst_9 = arith.constant 2.000000e+00 : f32
    %18 = vector.broadcast %cst_9 : f32 to vector<16x1xf32>
    %19 = arith.subf %18, %17 : vector<16x1xf32>
    %20 = arith.mulf %16, %19 : vector<16x1xf32>
    %21 = vector.broadcast %20 : vector<16x1xf32> to vector<16x128xf32>
    %22 = arith.mulf %13, %21 : vector<16x128xf32>
    %c0_10 = arith.constant 0 : index
    %c0_11 = arith.constant 0 : index
    %23 = vector.load %arg5[%c0_10, %c0_11] : memref<1x128xf32, #tpu.memory_space<vmem>>, vector<1x128xf32>
    %24 = vector.broadcast %23 : vector<1x128xf32> to vector<16x128xf32>
    %25 = arith.mulf %24, %5 : vector<16x128xf32>
    %26 = arith.addf %22, %25 : vector<16x128xf32>
    %c0_12 = arith.constant 0 : index
    %c0_13 = arith.constant 0 : index
    %27 = vector.load %arg6[%c0_12, %c0_13] : memref<16x128xf32, #tpu.memory_space<vmem>>, vector<16x128xf32>
    tpu.vector_store %arg6[%c0_12, %c0_13], %26 {strides = array<i32>} : memref<16x128xf32, #tpu.memory_space<vmem>>, vector<16x128xf32>,
    return
  }
  func.func @transform_0(%arg0: i32) -> (i32, i32) {
    %c0_i32 = arith.constant 0 : i32
    %c0_i32_0 = arith.constant 0 : i32
    return %arg0, %c0_i32 : i32, i32
  }
  func.func @transform_1(%arg0: i32) -> (i32, i32) {
    %c0_i32 = arith.constant 0 : i32
    %c0_i32_0 = arith.constant 0 : i32
    %c0_i32_1 = arith.constant 0 : i32
    return %c0_i32, %c0_i32_0 : i32, i32
  }
  func.func @transform_2(%arg0: i32) -> (i32, i32) {
    %c0_i32 = arith.constant 0 : i32
    %c0_i32_0 = arith.constant 0 : i32
    %c0_i32_1 = arith.constant 0 : i32
    return %c0_i32, %c0_i32_0 : i32, i32
  }
  func.func @transform_3(%arg0: i32) -> (i32, i32) {
    %c0_i32 = arith.constant 0 : i32
    %c0_i32_0 = arith.constant 0 : i32
    %c0_i32_1 = arith.constant 0 : i32
    return %c0_i32, %c0_i32_0 : i32, i32
  }
  func.func @transform_4(%arg0: i32) -> (i32, i32) {
    %c0_i32 = arith.constant 0 : i32
    %c0_i32_0 = arith.constant 0 : i32
    %c0_i32_1 = arith.constant 0 : i32
    return %c0_i32, %c0_i32_0 : i32, i32
  }
  func.func @transform_5(%arg0: i32) -> (i32, i32) {
    %c0_i32 = arith.constant 0 : i32
    %c0_i32_0 = arith.constant 0 : i32
    return %arg0, %c0_i32 : i32, i32
  }
}

</mosaic_0001>

<bundles_post_ra>
// kernel: tpu_custom_call.1
= control target key start
LH: loop header
LB: loop body
LE: loop exit
PB: predicated region body
PF: predicated region fallthrough
CT: control target
= control target key end

     0   :  { %10 = vsyncpa [#allocation3], 0  ;;  %s709_s0 = inlined_call_operand.vmem [shape: bf16[32,16], index: 0, kind: input, shape index: {}]   ;;  %s710_s1 = inlined_call_operand.vmem [shape: bf16[16,128], index: 1, kind: input, shape index: {}]   ;;  %s711_s2 = inlined_call_operand.vmem [shape: f32[1,128], index: 2, kind: input, shape index: {}]   ;;  %s712_s3 = inlined_call_operand.vmem [shape: f32[1,128], index: 3, kind: input, shape index: {}]   ;;  %s713_s4 = inlined_call_operand.vmem [shape: f32[1,128], index: 4, kind: input, shape index: {}]   ;;  %s714_s5 = inlined_call_operand.hbm [shape: f32[32,128], index: 5, kind: output, shape index: {}]  }
   0x1   :  { %12 = vsyncpa [#allocation3 + $0x1], 0  ;;  %s595_s18 = smov 0   ;;  %s597_s19 = smov 0  }
   0x2   :  { %s599_s20 = smov 0   ;;  %s601_s21 = smov 0  }
   0x3 LB: > { %s616_s22 = sadd.s32 4294967295, %s558_s21   ;;  %s416_s23 = sadd.s32 4294967294, %s558_s21   ;;  %s558_s21 = sphi %s601_s21, %s720_s21   ;;  %s554_s20 = sphi %s599_s20, %s719_s20   ;;  %s550_s19 = sphi %s597_s19, %s718_s19   ;;  %s546_s18 = sphi %s595_s18, %s717_s18  }
   0x4   : > { %s620_s24 = sadd.s32 1, %s558_s21   ;;  %s135_s25 = sadd.s32 1, %s554_s20 }
   0x5   : > { %s132_s26 = ssub.s32 %s558_s21, %s620_s24  ;;  %p145_p0 = scmp.ne.s32.totalorder %s554_s20, %s550_s19 }
   0x6   : > { %p133_p1 = scmp.eq.s32.totalorder %s132_s26, 0  ;;  %p146_p2 = scmp.eq.s32.totalorder %s616_s22, 1 }
   0x7   : > { %p151_p3 = scmp.ne.s32.totalorder %s550_s19, %s546_s18  ;;  %p152_p4 = scmp.eq.s32.totalorder %s416_s23, 1 }
   0x8   : > { %s631_s27 = scalar_select %p133_p1, %s554_s20, %s135_s25  }
   0x9   : > { %p633_p5 = por %p146_p2, %p145_p0  ;;  %p637_p6 = por %p152_p4, %p151_p3 }
   0xa   : > { %p419_p7 = scmp.ge.s32.totalorder %s558_s21, 1  ;;  %p191_p8 = scmp.lt.s32.totalorder %s558_s21, 3 }
   0xc   : > { %p192_p9 = pnand %p419_p7, %p191_p8 }
   0xd   : > { %v486_v0 = vld [vmem:[%s710_s1] sm:$0xff] (!%p192_p9)   ;;  %v560_v1 = vmov (!%p192_p9), 0.0   ;;  %s421_s7 = sshll.u32 (!%p192_p9), %s616_s22, 1  ;;  %vm561_vm0 = vmmov (!%p192_p9), 0   ;;  %vm249_vm1 = vcmask (!%p192_p9), 130048   ;;  %s216_s16 = sand.u32 (!%p192_p9), 1, %s550_s19  }
   0xe   : > { %195 = sbr.rel (%p192_p9) target bundleno = 580 (0x244), region = 40  ;;  %437 = vmatprep.subr.bf16.mxu0 (!%p192_p9), %v560_v1  ;;  %439 = vmatprep.mubr.msk.bf16.mxu0 (!%p192_p9), %vm561_vm0, %v560_v1  ;;  %p220_p10 = scmp.lt.s32.totalorder (!%p192_p9), %s421_s7, 3  ;;  %v423_v3 = vld [vmem:[%s711_s2] ss:$0 sm:$0xff] (!%p192_p9) }
   0xf   : > { %438 = vmatpush3.bf16.msra.mxu0 (!%p192_p9), %v486_v0  ;;  %v427_v5 = vld [vmem:[%s712_s3] ss:$0 sm:$0xff] (!%p192_p9)  ;;  %s420_s25 = sshll.u32 (!%p192_p9), %s216_s16, 4  ;;  %s434_s26 = sshll.u32 (!%p192_p9), %s616_s22, 8 }
  0x10   : > { %v428_v27 = vld [vmem:[%s713_s4] ss:$0 sm:$0xff] (!%p192_p9)  ;;  %s218_s30 = scalar_lea.vmem (!%p192_p9), [#allocation2], %s420_s25  ;;  %s664_s9 = scalar_lea.hbm (!%p192_p9), %s714_s5, %s434_s26 }
  0x11   : > { %s354_s6 = sshll.u32 (!%p192_p9), %s218_s30, 4  ;;  %s668_s10 = scalar_lea.sflag (!%p192_p9), [#allocation3], %s216_s16  ;;  %s666_s6 = int_to_ptr.vmem [resolvable:$true] %s354_s6 }
  0x12   : > { %s496_s22 = scalar_lea.vmem (!%p192_p9), %s666_s6, 256 }
  0x13   : > { %p497_p11 = scmp.ne.s32.totalorder (!%p192_p9), %s666_s6, %s496_s22 }
  0x15   : > { %s722_s7 = smov (!%p220_p10, %s421_s7), 3  ;;  %p498_p12 = pnand %p497_p11, %p633_p5 }
  0x16   : > { %s422_s8 = sshll.u32 %s722_s7, 2 }
  0x17   : > { %s223_s11 = scalar_lea.vmem %s709_s0, %s422_s8  ;;  %p499_p13 = pneg %p498_p12 }
  0x18   : > { %v487_v2 = vld [vmem:[%s223_s11] sm:$0xff]   ;;  %s562_s11 = smov [#allocation2]  }
  0x19   : > { %440 = vmatmul.mubr.msk.bf16.vlgmr.msra.gmra.mrb[0].mxu0 %vm249_vm1, %v487_v2  ;;  %s500_s12 = sshll.u32 %s562_s11, 4  ;;  %s501_s12 = int_to_ptr.vmem [resolvable:$false] %s500_s12 }
  0x1a   : > { %s502_s13 = scalar_lea.vmem %s501_s12, 512  ;;  %p503_p0 = scmp.lt.s32.totalorder %s666_s6, %s501_s12 }
  0x1b   : > { %p504_p1 = scmp.lt.s32.totalorder %s502_s13, %s496_s22 }
  0x1d   : > { %p505_p2 = por %p504_p1, %p503_p0 }
  0x1f   : > { %p506_p3 = pnand %p505_p2, %p499_p13 }
  0xec   : > { %v287_v4 = vpop.f32.mrb[0].mxu0 }
  0xed   : > { %v288_v6 = vadd.f32 %v423_v3, %v287_v4  ;;  %v441_v7 = vpop.f32.mrb[1].mxu0 }
  0xee   : > { %v290_v8 = vpop.f32.mrb[2].mxu0 }
  0xef   : > { %v291_v9 = vadd.f32 %v423_v3, %v290_v8  ;;  %v442_v10 = vpop.f32.mrb[3].mxu0  ;;  %v301_v11 = vadd.f32 %v427_v5, %v288_v6  ;;  %v334_v30 = vmul.f32 %v428_v27, %v288_v6 }
  0xf1   : > { %303 = vmax.xlane.f32.xlu0 %v301_v11  ;;  %v302_v12 = vadd.f32 %v427_v5, %v291_v9  ;;  %v335_v35 = vmul.f32 %v428_v27, %v291_v9 }
  0xf5   : > { %305 = vmax.xlane.f32.xlu0 %v302_v12 }
 0x17e   : > { %v304_v13 = vpop.xlane.xlu0 %303 }
 0x17f   : > { %v307_v14 = vsub.f32 %v301_v11, %v304_v13 }
 0x181   : > { %v309_v15 = vmul.f32 1.442695, %v307_v14 }
 0x182   : > { %v306_v16 = vpop.xlane.xlu0 %305 }
 0x183   : > { %488 = vpow2.f32 %v309_v15  ;;  %v308_v17 = vsub.f32 %v302_v12, %v306_v16 }
 0x185   : > { %v311_v18 = vmul.f32 1.442695, %v308_v17 }
 0x187   : > { %490 = vpow2.f32 %v311_v18 }
 0x18d   : > { %v489_v19 = vpop.eup %488 }
 0x18e   : > { %313 = vadd.xlane.f32.xlu1 %v489_v19 }
 0x191   : > { %v491_v20 = vpop.eup %490 }
 0x192   : > { %315 = vadd.xlane.f32.xlu1 %v491_v20 }
 0x21b   : > { %v314_v21 = vpop.xlane.xlu1 %313 }
 0x21c   : > { %492 = vrcp.f32 %v314_v21 }
 0x21f   : > { %v316_v22 = vpop.xlane.xlu1 %315 }
 0x220   : > { %494 = vrcp.f32 %v316_v22 }
 0x226   : > { %v493_v23 = vpop.eup %492 }
 0x227   : > { %v319_v24 = vmul.f32 %v493_v23, %v314_v21 }
 0x229   : > { %v321_v25 = vsub.f32 2.0, %v319_v24 }
 0x22a   : > { %v495_v26 = vpop.eup %494 }
 0x22b   : > { %v323_v28 = vmul.f32 %v493_v23, %v321_v25  ;;  %v320_v29 = vmul.f32 %v495_v26, %v316_v22 }
 0x22d   : > { %v325_v31 = vmul.f32 %v489_v19, %v323_v28  ;;  %v322_v32 = vsub.f32 2.0, %v320_v29 }
 0x22f   : > { %v336_v33 = vadd.f32 %v334_v30, %v325_v31  ;;  %v324_v34 = vmul.f32 %v495_v26, %v322_v32 }
 0x231   : > { %338 = vst [vmem:[%s218_s30] sm:$0xff] %v336_v33  ;;  %v326_v36 = vmul.f32 %v491_v20, %v324_v34 }
 0x233   : > { %v337_v37 = vadd.f32 %v335_v35, %v326_v36 }
 0x235   : > { %339 = vst [vmem:[%s218_s30 + $0x8] sm:$0xff] %v337_v37 }
 0x236   : > { %509 = shalt.err (!%p506_p3)
}
 0x237   : > { %s510_s14 = scalar_lea.hbm %s664_s9, 256  ;;  %s514_s17 = scalar_lea.hbm %s714_s5, 512 }
 0x238   : > { %p511_p4 = scmp.ne.s32.totalorder %s664_s9, %s510_s14  ;;  %p515_p9 = scmp.lt.u32.totalorder %s664_s9, %s714_s5 }
 0x239   : > { %p516_p10 = scmp.lt.u32.totalorder %s514_s17, %s510_s14  ;;  %p518_p12 = scmp.lt.u32.totalorder %s510_s14, %s664_s9 }
 0x23a   : > { %p512_p7 = pnand %p511_p4, %p633_p5 }
 0x23b   : > { %p517_p11 = por %p516_p10, %p515_p9 }
 0x23c   : > { %p513_p8 = pneg %p512_p7 }
 0x23d   : > { %p519_p13 = por %p518_p12, %p517_p11 }
 0x23f   : > { %p520_p0 = pnand %p519_p13, %p513_p8 }
 0x241   : > { %523 = shalt.err (!%p520_p0)
}
 0x242   : > { %s563_s26 = smov 128   ;;  %s564_s30 = smov 8  }
 0x243   : > { %443 = dma.vmem_to_hbm [thread:$0]  (%p633_p5), %s666_s6, 256, %s664_s9, %s668_s10, %s563_s26, %s563_s26, %s564_s30  }
 0x244 PF: > { %p449_p1 = scmp.ge.s32.totalorder %s558_s21, 2  ;;  %s369_s7 = sand.u32 1, %s546_s18  }
 0x245   : > { %s370_s8 = scalar_lea.sflag [#allocation3], %s369_s7 }
 0x246   : > { %p446_p2 = pnand %p449_p1, %p637_p6 }
 0x248   : > { %541 = dma.done.wait (!%p446_p2), %s370_s8, 256  }
 0x249   : > { %543 = vsyncadd (!%p446_p2), %s370_s8, 4294967040  ;;  %p15_p3 = scmp.ge.s32.totalorder %s620_s24, 4   ;;  %s717_s18 = smov %s550_s19 }
 0x24a   : > { %s718_s19 = smov %s554_s20  ;;  %s719_s20 = smov %s631_s27 }
 0x24b   : > { %s720_s21 = smov %s620_s24  ;;  %17 = sbr.rel (!%p15_p3) target bundleno = 3 (0x3), region = 75 }
 0x252   :  { %375 = vsyncpa [#allocation3], 1 }
 0x253   :  { %377 = vsyncpa [#allocation3 + $0x1], 1 }

</bundles_post_ra>
